<compile_context>
chip_gen: v6e
topology: v6e:2x2x1
jax: 0.10.0
libtpu: 0.0.40
codegen_flags: <defaults>
</compile_context>

<pallas_src>
import jax
import jax.numpy as jnp
from jax.experimental import pallas as pl
from jax.experimental.pallas import tpu as pltpu

_LANE = 128                      # TPU lane width
_BLOCK_BYTES = 2 * 1024 * 1024   # ~2 MiB per block/buffer: fits every gen's scoped VMEM
_SMALL_THRESHOLD = 32 * 1024     # elements; below this, plain jnp.abs wins


def _abs_kernel(x_ref, o_ref):
    # Elementwise abs on the whole VMEM tile (trivial VPU work; kernel is
    # HBM-bandwidth bound, so the only job here is full-vreg loads/stores).
    o_ref[...] = jnp.abs(x_ref[...])


def _round_up(n: int, m: int) -> int:
    return ((n + m - 1) // m) * m


def pallas_abs(x: jax.Array, *, donate: bool = False,
               small_threshold: int = _SMALL_THRESHOLD) -> jax.Array:
    """Elementwise absolute value via a Pallas TPU kernel. Matches torch.abs."""
    orig_shape = x.shape
    total = x.size

    # ---- fast paths -------------------------------------------------------
    if total == 0:
        return x
    if jnp.issubdtype(x.dtype, jnp.complexfloating):
        # jnp.abs(complex) changes dtype; no benefit to a custom kernel here.
        return jnp.abs(x)
    if total < small_threshold:
        # Launch + reshape overhead dominates for tiny tensors.
        return jnp.abs(x)

    itemsize = jnp.dtype(x.dtype).itemsize
    pack = max(8, 32 // itemsize)  # sublane packing: 8 (f32), 16 (bf16), 32 (int8)

    # ---- lane-dense 2-D slab, avoiding pad/slice when possible ------------
    cols = None
    for c in (512, 256, 128):      # prefer 4 full vregs per sublane row
        if total % c == 0:
            cols = c
            break
    flat = x.reshape(-1)
    pad = 0
    if cols is None:
        # Rare ragged case: pad with zeros (|0| = 0), sliced off afterwards.
        cols = _LANE
        pad = (-total) % cols
        flat = jnp.pad(flat, (0, pad))
    rows = (total + pad) // cols
    x2d = flat.reshape(rows, cols)

    # ---- block size: ~2 MiB per buffer, dtype-scaled, packing-aligned -----
    tm_max = max(pack, (_BLOCK_BYTES // (cols * itemsize)) // pack * pack)
    if rows <= tm_max:
        if rows >= 2 * pack:
            # Split into (at least) 2 blocks so v7x's two TensorCores both
            # get work under dimension_semantics=("parallel",).
            tm = _round_up(pl.cdiv(rows, 2), pack)
        else:
            tm = rows              # block == full dim (always legal)
    else:
        tm = tm_max                # multiple of `pack` (>= 8), (8,128)-legal

    grid = (pl.cdiv(rows, tm),)

    out2d = pl.pallas_call(
        _abs_kernel,
        out_shape=jax.ShapeDtypeStruct((rows, cols), x.dtype),
        grid=grid,
        in_specs=[pl.BlockSpec((tm, cols), lambda i: (i, 0))],
        out_specs=pl.BlockSpec((tm, cols), lambda i: (i, 0)),
        # Only alias when the caller actually donates x (otherwise XLA may
        # insert a defensive full-array copy, wiping out any gain).
        input_output_aliases=({0: 0} if donate else {}),
        compiler_params=pltpu.CompilerParams(
            # Parallel grid axis -> shards across the 2 TensorCores on v7x.
            dimension_semantics=("parallel",),
        ),
        cost_estimate=pl.CostEstimate(
            flops=total,
            transcendentals=0,
            bytes_accessed=2 * total * itemsize,
        ),
    )(x2d)

    out_flat = out2d.reshape(-1)
    if pad:
        out_flat = out_flat[:total]
    return out_flat.reshape(orig_shape)


if __name__ == "__main__":
    key = jax.random.PRNGKey(0)
    key_small, key_big = jax.random.split(key)

    # Spec shape: NCHW [N=2, C=4, H=16, W=16]. Force the Pallas path so the
    # kernel is exercised at the module's test shape.
    x_small = jax.random.normal(key_small, (2, 4, 16, 16), dtype=jnp.float32)
    y_small = pallas_abs(x_small, small_threshold=0)
    jax.block_until_ready(y_small)
    assert y_small.shape == x_small.shape and y_small.dtype == x_small.dtype
    assert bool(jnp.allclose(y_small, jnp.abs(x_small))), "Pallas abs mismatch (small)"

    # Default path for the small shape (XLA fast path) -- parity check.
    y_fast = pallas_abs(x_small)
    jax.block_until_ready(y_fast)
    assert bool(jnp.allclose(y_fast, jnp.abs(x_small))), "fast-path abs mismatch"

    # Larger input exercising the tiled, >=2-step parallel grid (no padding:
    # total = 131072 is a multiple of 512).
    x_big = jax.random.normal(key_big, (4, 8, 64, 64), dtype=jnp.float32)
    y_big = pallas_abs(x_big)
    jax.block_until_ready(y_big)
    assert bool(jnp.allclose(y_big, jnp.abs(x_big))), "Pallas abs mismatch (big)"

    print("KERNEL_OK")
</pallas_src>

<mosaic_0001>
module attributes {stable_mosaic.version = 11 : i64} {
  func.func @_abs_kernel(%arg0: i32, %arg1: memref<4x512xf32, #tpu.memory_space<vmem>>, %arg2: memref<4x512xf32, #tpu.memory_space<vmem>>) attributes {dimension_semantics = [#tpu.dimension_semantics<parallel>], iteration_bounds = array<i64: 1>, scalar_prefetch = 0 : i64, scratch_operands = 0 : i64, tpu.core_type = #tpu.core_type<tc>, window_params = [{transform_indices = @transform_0, window_bounds = array<i64: 4, 512>}, {transform_indices = @transform_1, window_bounds = array<i64: 4, 512>}]} {
    %c0 = arith.constant 0 : index
    %c0_0 = arith.constant 0 : index
    %0 = vector.load %arg1[%c0, %c0_0] : memref<4x512xf32, #tpu.memory_space<vmem>>, vector<4x512xf32>
    %1 = math.absf %0 : vector<4x512xf32>
    %c0_1 = arith.constant 0 : index
    %c0_2 = arith.constant 0 : index
    %2 = vector.load %arg2[%c0_1, %c0_2] : memref<4x512xf32, #tpu.memory_space<vmem>>, vector<4x512xf32>
    tpu.vector_store %arg2[%c0_1, %c0_2], %1 {strides = array<i32>} : memref<4x512xf32, #tpu.memory_space<vmem>>, vector<4x512xf32>,
    return
  }
  func.func @transform_0(%arg0: i32) -> (i32, i32) {
    %c0_i32 = arith.constant 0 : i32
    %c0_i32_0 = arith.constant 0 : i32
    return %arg0, %c0_i32 : i32, i32
  }
  func.func @transform_1(%arg0: i32) -> (i32, i32) {
    %c0_i32 = arith.constant 0 : i32
    %c0_i32_0 = arith.constant 0 : i32
    return %arg0, %c0_i32 : i32, i32
  }
}

</mosaic_0001>

<bundles_post_ra>
// kernel: tpu_custom_call.1
= control target key start
LH: loop header
LB: loop body
LE: loop exit
PB: predicated region body
PF: predicated region fallthrough
CT: control target
= control target key end

     0   :  { %6 = vsyncpa [#allocation3], 0  ;;  %s106_s0 = inlined_call_operand.hbm [shape: f32[4,512], index: 0, kind: input, shape index: {}]   ;;  %s107_s1 = inlined_call_operand.hbm [shape: f32[4,512], index: 1, kind: output, shape index: {}]  }
   0x1   :  { %7 = vsyncpa [#allocation4], 0  ;;  %s88_s6 = smov [#allocation2]  }
   0x2   :  { %s14_s7 = sshll.u32 %s88_s6, 4  ;;  %s15_s7 = int_to_ptr.vmem [resolvable:$true] %s14_s7 }
   0x3   :  { %s52_s8 = scalar_lea.vmem %s15_s7, 256  ;;  %p57_p1 = scmp.lt.s32.totalorder %s15_s7, %s15_s7 }
   0x4   :  { %p53_p0 = scmp.ne.s32.totalorder %s15_s7, %s52_s8  ;;  %p58_p2 = scmp.lt.s32.totalorder %s52_s8, %s52_s8 }
   0x6   :  { %p59_p3 = por %p58_p2, %p57_p1 }
   0x8   :  { %p60_p4 = pnand %p59_p3, %p53_p0 }
   0xa   :  { %63 = shalt.err (!%p60_p4)
}
   0xb   :  { %17 = dma.hbm_to_vmem [thread:$0]  %s106_s0, 256, %s15_s7, [#allocation3]  }
   0xc   :  { %84 = dma.done.wait [#allocation3], 256  }
   0xd   :  { %85 = vsyncadd [#allocation3], 4294967040  ;;  %s89_s11 = smov [#allocation5]   ;;  %v21_v0 = vld [vmem:[#allocation2] sm:$0xff]  ;;  %v22_v1 = vld [vmem:[#allocation2 + $0x8] sm:$0xff] }
   0xe   :  { %s33_s12 = sshll.u32 %s89_s11, 4  ;;  %v23_v2 = vand.u32 2147483647, %v21_v0  ;;  %v24_v3 = vand.u32 2147483647, %v22_v1  ;;  %s34_s12 = int_to_ptr.vmem [resolvable:$true] %s33_s12 }
   0xf   :  { %s64_s13 = scalar_lea.vmem %s34_s12, 256  ;;  %p69_p6 = scmp.lt.s32.totalorder %s34_s12, %s34_s12 }
  0x10   :  { %25 = vst [vmem:[#allocation5] sm:$0xff] %v23_v2  ;;  %26 = vst [vmem:[#allocation5 + $0x8] sm:$0xff] %v24_v3  ;;  %p65_p5 = scmp.ne.s32.totalorder %s34_s12, %s64_s13  ;;  %p70_p7 = scmp.lt.s32.totalorder %s64_s13, %s64_s13 }
  0x12   :  { %p71_p8 = por %p70_p7, %p69_p6 }
  0x14   :  { %p72_p9 = pnand %p71_p8, %p65_p5 }
  0x16   :  { %75 = shalt.err (!%p72_p9)
}
  0x17   :  { %36 = dma.vmem_to_hbm [thread:$0]  %s34_s12, 256, %s107_s1, [#allocation4]  }
  0x18   :  { %86 = dma.done.wait [#allocation4], 256  }
  0x19   :  { %87 = vsyncadd [#allocation4], 4294967040 }
  0x1a   :  { %40 = vsyncpa [#allocation3], 1 }
  0x1b   :  { %41 = vsyncpa [#allocation4], 1 }

</bundles_post_ra>
